<compile_context>
chip_gen: v7x
topology: tpu7x:2x2x1
jax: 0.10.0
libtpu: 0.0.40
codegen_flags: <defaults>
</compile_context>

<pallas_src>
import functools
import math

import jax
import jax.numpy as jnp
from jax.experimental import pallas as pl
from jax.experimental.pallas import tpu as pltpu


def _round_up(x, m):
    return ((x + m - 1) // m) * m


# --------------------------------------------------------------------------
# Kernels
# --------------------------------------------------------------------------

def _linear_kernel_resident_w(x_ref, w_ref, b_ref, o_ref, *, tk):
    # x_ref: (tm, tk)   bf16 input tile
    # w_ref: (kp, np_)  bf16 weight (pre-transposed), fully VMEM-resident
    # b_ref: (1, np_)   f32 bias, fully VMEM-resident
    # o_ref: (tm, np_)  f32 output tile, resident across the K grid axis
    k = pl.program_id(1)

    @pl.when(k == 0)
    def _():
        # Fold the bias into the accumulator init (no finalize add needed).
        o_ref[...] = jnp.broadcast_to(b_ref[...], o_ref.shape)

    w_tile = w_ref[pl.ds(pl.multiple_of(k * tk, tk), tk), :]
    o_ref[...] += jnp.dot(x_ref[...], w_tile, preferred_element_type=jnp.float32)


def _linear_kernel_streaming_w(x_ref, w_ref, b_ref, o_ref):
    # x_ref: (tm, tk) bf16; w_ref: (tk, tn) bf16 (pre-transposed); b_ref: (1, tn) f32
    # o_ref: (tm, tn) f32, resident across the K grid axis
    k = pl.program_id(2)

    @pl.when(k == 0)
    def _():
        o_ref[...] = jnp.broadcast_to(b_ref[...], o_ref.shape)

    o_ref[...] += jnp.dot(x_ref[...], w_ref[...],
                          preferred_element_type=jnp.float32)


# --------------------------------------------------------------------------
# Wrapper
# --------------------------------------------------------------------------

def logistic_regression_forward(x, weight, bias, *, tm=512, tk=512, tn=256,
                                compute_dtype=jnp.bfloat16):
    """Forward pass of LogisticRegression (a single nn.Linear).

    x:      (batch, input_dim)       float32
    weight: (output_dim, input_dim)  float32 (PyTorch layout)
    bias:   (output_dim,)            float32
    returns (batch, output_dim)      float32
    """
    batch, input_dim = x.shape
    output_dim = weight.shape[0]
    out_dtype = x.dtype

    # ---- alignment / tile sizing -------------------------------------------------
    kp = _round_up(input_dim, 128)      # lane-aligned K
    np_ = _round_up(output_dim, 128)    # lane-aligned N
    mp = _round_up(batch, 16)           # bf16-friendly sublane alignment for M

    tm = min(tm, mp)
    tk = min(tk, kp)
    tn = min(tn, np_)

    # Pick tk / tn that exactly divide the aligned dims (no extra zero-padding of K/N).
    if kp % tk:
        tk = 128 * math.gcd(kp // 128, tk // 128)
    if np_ % tn:
        tn = 128 * math.gcd(np_ // 128, tn // 128)

    # v7x: keep >= 2 blocks along the parallel M axis so both TensorCores get work.
    if mp // tm < 2 and mp >= 32:
        tm = _round_up(mp // 2, 16)

    bp = _round_up(mp, tm)

    # Resident-weight path when W (bf16) fits a modest VMEM budget — the usual
    # logistic-regression case.  Otherwise stream W tiles over an (M, N, K) grid.
    itemsize = jnp.dtype(compute_dtype).itemsize
    resident_w = (kp * np_ * itemsize <= 4 * 1024 * 1024) and (np_ <= 1024)

    # ---- prepare operands (pad + cast fuse into a single HBM pass each) ----------
    x_p = x.astype(compute_dtype)
    if bp != batch or kp != input_dim:
        x_p = jnp.pad(x_p, ((0, bp - batch), (0, kp - input_dim)))

    # One-time tiny transpose of the PyTorch-layout weight -> canonical (K, N) RHS.
    wt = weight.T.astype(compute_dtype)
    if kp != input_dim or np_ != output_dim:
        wt = jnp.pad(wt, ((0, kp - input_dim), (0, np_ - output_dim)))

    b2 = bias.astype(jnp.float32)
    if np_ != output_dim:
        b2 = jnp.pad(b2, (0, np_ - output_dim))
    b2 = b2.reshape(1, np_)

    cost = pl.CostEstimate(
        flops=2 * bp * kp * np_,
        transcendentals=0,
        bytes_accessed=(x_p.size * itemsize + wt.size * itemsize
                        + b2.size * 4 + bp * np_ * 4),
    )
    cparams = pltpu.CompilerParams(
        dimension_semantics=(("parallel", "arbitrary") if resident_w
                             else ("parallel", "parallel", "arbitrary")),
        vmem_limit_bytes=32 * 1024 * 1024,
    )

    if resident_w:
        grid = (bp // tm, kp // tk)
        out = pl.pallas_call(
            functools.partial(_linear_kernel_resident_w, tk=tk),
            out_shape=jax.ShapeDtypeStruct((bp, np_), jnp.float32),
            grid_spec=pltpu.PrefetchScalarGridSpec(
                num_scalar_prefetch=0,
                grid=grid,
                in_specs=[
                    pl.BlockSpec((tm, tk), lambda i, k: (i, k)),    # x tile
                    pl.BlockSpec((kp, np_), lambda i, k: (0, 0)),   # W resident (1 DMA)
                    pl.BlockSpec((1, np_), lambda i, k: (0, 0)),    # bias resident
                ],
                out_specs=pl.BlockSpec((tm, np_), lambda i, k: (i, 0)),
            ),
            compiler_params=cparams,
            cost_estimate=cost,
        )(x_p, wt, b2)
    else:
        grid = (bp // tm, np_ // tn, kp // tk)
        out = pl.pallas_call(
            _linear_kernel_streaming_w,
            out_shape=jax.ShapeDtypeStruct((bp, np_), jnp.float32),
            grid_spec=pltpu.PrefetchScalarGridSpec(
                num_scalar_prefetch=0,
                grid=grid,
                in_specs=[
                    pl.BlockSpec((tm, tk), lambda i, j, k: (i, k)),  # x tile
                    pl.BlockSpec((tk, tn), lambda i, j, k: (k, j)),  # W tile (K, N)
                    pl.BlockSpec((1, tn), lambda i, j, k: (0, j)),   # bias tile
                ],
                out_specs=pl.BlockSpec((tm, tn), lambda i, j, k: (i, j)),
            ),
            compiler_params=cparams,
            cost_estimate=cost,
        )(x_p, wt, b2)

    return out[:batch, :output_dim].astype(out_dtype)


if __name__ == "__main__":
    # Small shapes consistent with the module: (batch, input_dim) features-last.
    batch = 8
    input_dim = 32
    output_dim = 16

    key = jax.random.PRNGKey(0)
    kx, kw, kb = jax.random.split(key, 3)

    x = jax.random.normal(kx, (batch, input_dim), dtype=jnp.float32)

    # Deterministic PyTorch-style nn.Linear init: U(-1/sqrt(fan_in), 1/sqrt(fan_in)).
    bound = 1.0 / math.sqrt(input_dim)
    weight = jax.random.uniform(
        kw, (output_dim, input_dim), minval=-bound, maxval=bound, dtype=jnp.float32
    )
    bias = jax.random.uniform(
        kb, (output_dim,), minval=-bound, maxval=bound, dtype=jnp.float32
    )

    y = logistic_regression_forward(x, weight, bias)
    jax.block_until_ready(y)

    # Sanity check against the plain-JAX f32 reference.  Inputs are fed to the MXU
    # in bf16 (f32 accumulation), so allow bf16-level tolerance.
    y_ref = x @ weight.T + bias
    assert y.shape == (batch, output_dim)
    assert jnp.allclose(y, y_ref, atol=5e-2, rtol=5e-2)

    print("KERNEL_OK")
</pallas_src>

<mosaic_0001>
module attributes {stable_mosaic.version = 11 : i64} {
  func.func @_linear_kernel_resident_w(%arg0: i32, %arg1: i32, %arg2: memref<16x128xbf16, #tpu.memory_space<vmem>>, %arg3: memref<128x128xbf16, #tpu.memory_space<vmem>>, %arg4: memref<1x128xf32, #tpu.memory_space<vmem>>, %arg5: memref<16x128xf32, #tpu.memory_space<vmem>>) attributes {dimension_semantics = [#tpu.dimension_semantics<parallel>, #tpu.dimension_semantics<arbitrary>], iteration_bounds = array<i64: 1, 1>, scalar_prefetch = 0 : i64, scratch_operands = 0 : i64, tpu.core_type = #tpu.core_type<tc>, window_params = [{transform_indices = @transform_0, window_bounds = array<i64: 16, 128>}, {pipeline_mode = #tpu.pipeline_mode<synchronous>, transform_indices = @transform_1, window_bounds = array<i64: 128, 128>}, {pipeline_mode = #tpu.pipeline_mode<synchronous>, transform_indices = @transform_2, window_bounds = array<i64: 1, 128>}, {transform_indices = @transform_3, window_bounds = array<i64: 16, 128>}]} {
    %c0_i32 = arith.constant 0 : i32
    %0 = arith.cmpi eq, %arg1, %c0_i32 : i32
    %1 = arith.extui %0 : i1 to i32
    %c0_i32_0 = arith.constant 0 : i32
    %2 = arith.cmpi ne, %1, %c0_i32_0 : i32
    scf.if %2 {
      %c0_7 = arith.constant 0 : index
      %c0_8 = arith.constant 0 : index
      %12 = vector.load %arg4[%c0_7, %c0_8] : memref<1x128xf32, #tpu.memory_space<vmem>>, vector<1x128xf32>
      %13 = vector.shape_cast %12 : vector<1x128xf32> to vector<1x128xf32>
      %14 = vector.broadcast %13 : vector<1x128xf32> to vector<16x128xf32>
      %c0_9 = arith.constant 0 : index
      %c0_10 = arith.constant 0 : index
      %15 = vector.load %arg5[%c0_9, %c0_10] : memref<16x128xf32, #tpu.memory_space<vmem>>, vector<16x128xf32>
      tpu.vector_store %arg5[%c0_9, %c0_10], %14 {strides = array<i32>} : memref<16x128xf32, #tpu.memory_space<vmem>>, vector<16x128xf32>,
    } else {
    }
    %c128_i32 = arith.constant 128 : i32
    %3 = arith.muli %arg1, %c128_i32 : i32
    %4 = tpu.assume_multiple %3, 128 : i32
    %5 = arith.index_cast %4 : i32 to index
    %c0 = arith.constant 0 : index
    %6 = vector.load %arg3[%5, %c0] : memref<128x128xbf16, #tpu.memory_space<vmem>>, vector<128x128xbf16>
    %c0_1 = arith.constant 0 : index
    %c0_2 = arith.constant 0 : index
    %7 = vector.load %arg5[%c0_1, %c0_2] : memref<16x128xf32, #tpu.memory_space<vmem>>, vector<16x128xf32>
    %c0_3 = arith.constant 0 : index
    %c0_4 = arith.constant 0 : index
    %8 = vector.load %arg2[%c0_3, %c0_4] : memref<16x128xbf16, #tpu.memory_space<vmem>>, vector<16x128xbf16>
    %cst = arith.constant dense<0.000000e+00> : vector<16x128xf32>
    %9 = tpu.matmul %8, %6, %cst {dimension_numbers = #tpu.dot_dimension_numbers<[1], [0], [0], [1], [0, 0, 1, 1], [], []>} : vector<16x128xbf16>, vector<128x128xbf16>, vector<16x128xf32> -> vector<16x128xf32>
    %10 = arith.addf %7, %9 : vector<16x128xf32>
    %c0_5 = arith.constant 0 : index
    %c0_6 = arith.constant 0 : index
    %11 = vector.load %arg5[%c0_5, %c0_6] : memref<16x128xf32, #tpu.memory_space<vmem>>, vector<16x128xf32>
    tpu.vector_store %arg5[%c0_5, %c0_6], %10 {strides = array<i32>} : memref<16x128xf32, #tpu.memory_space<vmem>>, vector<16x128xf32>,
    return
  }
  func.func @transform_0(%arg0: i32, %arg1: i32) -> (i32, i32) {
    %c0_i32 = arith.constant 0 : i32
    return %arg0, %arg1 : i32, i32
  }
  func.func @transform_1(%arg0: i32, %arg1: i32) -> (i32, i32) {
    %c0_i32 = arith.constant 0 : i32
    %c0_i32_0 = arith.constant 0 : i32
    %c0_i32_1 = arith.constant 0 : i32
    return %c0_i32, %c0_i32_0 : i32, i32
  }
  func.func @transform_2(%arg0: i32, %arg1: i32) -> (i32, i32) {
    %c0_i32 = arith.constant 0 : i32
    %c0_i32_0 = arith.constant 0 : i32
    %c0_i32_1 = arith.constant 0 : i32
    return %c0_i32, %c0_i32_0 : i32, i32
  }
  func.func @transform_3(%arg0: i32, %arg1: i32) -> (i32, i32) {
    %c0_i32 = arith.constant 0 : i32
    %c0_i32_0 = arith.constant 0 : i32
    return %arg0, %c0_i32 : i32, i32
  }
}

</mosaic_0001>

<bundles_post_ra>
// kernel: tpu_custom_call.1
= control target key start
LH: loop header
LB: loop body
LE: loop exit
PB: predicated region body
PF: predicated region fallthrough
CT: control target
= control target key end

     0   :  { %8 = vsyncpa [#allocation3], 0  ;;  %s398_s0 = inlined_call_operand.hbm [shape: bf16[16,128], index: 0, kind: input, shape index: {}]   ;;  %s399_s1 = inlined_call_operand.hbm [shape: bf16[128,128], index: 1, kind: input, shape index: {}]   ;;  %s400_s2 = inlined_call_operand.vmem [shape: f32[1,128], index: 2, kind: input, shape index: {}]   ;;  %s401_s3 = inlined_call_operand.hbm [shape: f32[16,128], index: 3, kind: output, shape index: {}]  }
   0x1   :  { %9 = vsyncpa [#allocation6], 0 }
   0x2   :  { %10 = vsyncpa [#allocation4], 0  ;;  %s330_s12 = smov [#allocation2]   ;;  %s258_s16 = scalar_lea.hbm %s398_s0, 128 }
   0x3   :  { %s16_s13 = sshll.u32 %s330_s12, 4  ;;  %p259_p0 = scmp.ne.s32.totalorder %s398_s0, %s258_s16  ;;  %s17_s13 = int_to_ptr.vmem [resolvable:$true] %s16_s13 }
   0x4   :  { %p262_p1 = scmp.lt.u32.totalorder %s258_s16, %s398_s0 }
   0x6   :  { %p264_p2 = pnand %p262_p1, %p259_p0 }
   0x8   :  { %267 = shalt.err (!%p264_p2)
}
   0x9   :  { %s268_s21 = scalar_lea.vmem %s17_s13, 128  ;;  %p273_p4 = scmp.lt.s32.totalorder %s17_s13, %s17_s13 }
   0xa   :  { %p269_p3 = scmp.ne.s32.totalorder %s17_s13, %s268_s21  ;;  %p274_p5 = scmp.lt.s32.totalorder %s268_s21, %s268_s21 }
   0xc   :  { %p275_p6 = por %p274_p5, %p273_p4 }
   0xe   :  { %p276_p7 = pnand %p275_p6, %p269_p3 }
  0x10   :  { %279 = shalt.err (!%p276_p7)
}
  0x11   :  { %s331_s22 = smov 64   ;;  %s332_s23 = smov 4  }
  0x12   :  { %22 = dma.hbm_to_vmem [thread:$0]  %s398_s0, 128, %s17_s13, [#allocation3], %s331_s22, %s331_s22, %s332_s23  }
  0x13   :  { %s333_s26 = smov [#allocation5]   ;;  %s280_s30 = scalar_lea.hbm %s399_s1, 1024 }
  0x14   :  { %s28_s27 = sshll.u32 %s333_s26, 4  ;;  %p281_p8 = scmp.ne.s32.totalorder %s399_s1, %s280_s30  ;;  %s29_s27 = int_to_ptr.vmem [resolvable:$true] %s28_s27 }
  0x15   :  { %p284_p9 = scmp.lt.u32.totalorder %s280_s30, %s399_s1 }
  0x17   :  { %p286_p10 = pnand %p284_p9, %p281_p8 }
  0x19   :  { %289 = shalt.err (!%p286_p10)
}
  0x1a   :  { %s290_s8 = scalar_lea.vmem %s29_s27, 1024  ;;  %p295_p12 = scmp.lt.s32.totalorder %s29_s27, %s29_s27 }
  0x1b   :  { %p291_p11 = scmp.ne.s32.totalorder %s29_s27, %s290_s8  ;;  %p296_p13 = scmp.lt.s32.totalorder %s290_s8, %s290_s8 }
  0x1d   :  { %p297_p0 = por %p296_p13, %p295_p12 }
  0x1f   :  { %p298_p1 = pnand %p297_p0, %p291_p11 }
  0x21   :  { %301 = shalt.err (!%p298_p1)
}
  0x22   :  { %34 = dma.hbm_to_vmem [thread:$0]  %s399_s1, 1024, %s29_s27, [#allocation6], %s331_s22, %s331_s22, %s332_s23  }
  0x23   :  { %324 = dma.done.wait [#allocation3], 128  }
  0x24   :  { %325 = vsyncadd [#allocation3], 4294967168 }
  0x25   :  { %326 = dma.done.wait [#allocation6], 1024  }
  0x26   :  { %327 = vsyncadd [#allocation6], 4294966272  ;;  %v334_v0 = vmov 0.0   ;;  %vm335_vm0 = vmmov 0   ;;  %v249_v1 = vld [vmem:[#allocation5] sm:$0xff]   ;;  %v250_v2 = vld [vmem:[#allocation5 + $0x8] sm:$0xff]  }
  0x27   :  { %220 = vmatprep.subr.bf16.mxu0 %v334_v0  ;;  %236 = vmatprep.mubr.msk.bf16.mxu0 %vm335_vm0, %v334_v0  ;;  %v251_v3 = vld [vmem:[#allocation5 + $0x10] sm:$0xff]   ;;  %v252_v4 = vld [vmem:[#allocation5 + $0x18] sm:$0xff]   ;;  %v253_v5 = vld [vmem:[#allocation5 + $0x20] sm:$0xff]   ;;  %s336_s11 = smov [#allocation7]  }
  0x28   :  { %221 = vmatpush3.bf16.msra.mxu0 %v249_v1  ;;  %v254_v6 = vld [vmem:[#allocation5 + $0x28] sm:$0xff]   ;;  %v255_v7 = vld [vmem:[#allocation5 + $0x30] sm:$0xff]   ;;  %v256_v8 = vld [vmem:[#allocation5 + $0x38] sm:$0xff]   ;;  %s186_s12 = sshll.u32 %s336_s11, 4  ;;  %s187_s12 = int_to_ptr.vmem [resolvable:$true] %s186_s12 }
  0x29   :  { %222 = vmatprep.subr.bf16.mxu0 %v334_v0  ;;  %v257_v9 = vld [vmem:[#allocation2] sm:$0xff]   ;;  %s302_s13 = scalar_lea.vmem %s187_s12, 256  ;;  %p307_p3 = scmp.lt.s32.totalorder %s187_s12, %s187_s12 }
  0x2a   :  { %v201_v10 = vld [vmem:[%s400_s2] ss:$0 sm:$0xff]  ;;  %p303_p2 = scmp.ne.s32.totalorder %s187_s12, %s302_s13  ;;  %p308_p4 = scmp.lt.s32.totalorder %s302_s13, %s302_s13 }
  0x2c   :  { %223 = vmatpush3.bf16.msra.mxu0 %v250_v2  ;;  %p309_p5 = por %p308_p4, %p307_p3 }
  0x2d   :  { %224 = vmatprep.subr.bf16.mxu0 %v334_v0 }
  0x2e   :  { %p310_p6 = pnand %p309_p5, %p303_p2 }
  0x30   :  { %225 = vmatpush3.bf16.msra.mxu0 %v251_v3 }
  0x31   :  { %226 = vmatprep.subr.bf16.mxu0 %v334_v0 }
  0x34   :  { %227 = vmatpush3.bf16.msra.mxu0 %v252_v4 }
  0x35   :  { %228 = vmatprep.subr.bf16.mxu0 %v334_v0 }
  0x38   :  { %229 = vmatpush3.bf16.msra.mxu0 %v253_v5 }
  0x39   :  { %230 = vmatprep.subr.bf16.mxu0 %v334_v0 }
  0x3c   :  { %231 = vmatpush3.bf16.msra.mxu0 %v254_v6 }
  0x3d   :  { %232 = vmatprep.subr.bf16.mxu0 %v334_v0 }
  0x40   :  { %233 = vmatpush3.bf16.msra.mxu0 %v255_v7 }
  0x41   :  { %234 = vmatprep.subr.bf16.mxu0 %v334_v0 }
  0x44   :  { %235 = vmatpush3.bf16.msra.mxu0 %v256_v8 }
  0x47   :  { %237 = vmatmul.mubr.bf16.vlgmr.msra.gmra.mrb[0].mxu0 %v257_v9 }
 0x11a   :  { %v170_v11 = vpop.f32.mrb[0].mxu0 }
 0x11b   :  { %v177_v12 = vadd.f32 %v201_v10, %v170_v11  ;;  %v238_v13 = vpop.f32.mrb[1].mxu0 }
 0x11c   :  { %v173_v14 = vpop.f32.mrb[2].mxu0 }
 0x11d   :  { %179 = vst [vmem:[#allocation7] sm:$0xff] %v177_v12  ;;  %v178_v15 = vadd.f32 %v201_v10, %v173_v14  ;;  %v239_v16 = vpop.f32.mrb[3].mxu0 }
 0x11f   :  { %180 = vst [vmem:[#allocation7 + $0x8] sm:$0xff] %v178_v15 }
 0x120   :  { %313 = shalt.err (!%p310_p6)
}
 0x121   :  { %s314_s15 = scalar_lea.hbm %s401_s3, 256 }
 0x122   :  { %p315_p7 = scmp.ne.s32.totalorder %s401_s3, %s314_s15  ;;  %p318_p8 = scmp.lt.u32.totalorder %s314_s15, %s401_s3 }
 0x124   :  { %p320_p9 = pnand %p318_p8, %p315_p7 }
 0x126   :  { %323 = shalt.err (!%p320_p9)
}
 0x127   :  { %s337_s20 = smov 128   ;;  %s338_s21 = smov 8  }
 0x128   :  { %192 = dma.vmem_to_hbm [thread:$0]  %s187_s12, 256, %s401_s3, [#allocation4], %s337_s20, %s337_s20, %s338_s21  }
 0x129   :  { %328 = dma.done.wait [#allocation4], 256  }
 0x12a   :  { %329 = vsyncadd [#allocation4], 4294967040 }
 0x12b   :  { %196 = vsyncpa [#allocation3], 1 }
 0x12c   :  { %197 = vsyncpa [#allocation6], 1 }
 0x12d   :  { %198 = vsyncpa [#allocation4], 1 }

</bundles_post_ra>
